<compile_context>
chip_gen: v7x
topology: tpu7x:2x2x1
jax: 0.10.0
libtpu: 0.0.40
codegen_flags: <defaults>
</compile_context>

<pallas_src>
import math
import functools

import jax
import jax.numpy as jnp
from jax.experimental import pallas as pl
from jax.experimental.pallas import tpu as pltpu


_TARGET_TILE_BYTES = 6 * 1024 * 1024     # ~6 MiB of emb per block
_VMEM_LIMIT_BYTES = 48 * 1024 * 1024     # 4x block + pe double-buffer fits comfortably
_MIN_PALLAS_BYTES = 1 * 1024 * 1024      # below this, XLA fusion beats a kernel launch
_MAX_BATCH_PER_BLOCK = 16                # keep the in-kernel per-batch unroll short


def make_pe(max_len: int, dim: int) -> jnp.ndarray:
    """Sinusoidal positional-encoding table, shape (max_len, dim), float32."""
    if dim % 2 != 0:
        raise ValueError(f"Cannot use sin/cos positional encoding with odd dim (got dim={dim})")
    position = jnp.arange(0, max_len, dtype=jnp.float32)[:, None]            # (max_len, 1)
    div_term = jnp.exp(
        jnp.arange(0, dim, 2, dtype=jnp.float32) * (-(math.log(10000.0) / dim))
    )                                                                         # (dim/2,)
    ang = position * div_term                                                 # (max_len, dim/2)
    pe = jnp.zeros((max_len, dim), dtype=jnp.float32)
    pe = pe.at[:, 0::2].set(jnp.sin(ang))
    pe = pe.at[:, 1::2].set(jnp.cos(ang))
    return pe


def _sublane_multiple(itemsize: int) -> int:
    # f32 -> 8 rows/vreg, bf16 -> 16, int8/fp8 -> 32
    return max(8, 32 // int(itemsize))


def _pos_enc_kernel(emb_ref, pe_ref, out_ref, *, scale, d, batch_per_block):
    # emb_ref / out_ref: (tS, batch_per_block * D) lane-dense; pe_ref: (tS, D) f32.
    pe = pe_ref[...]                                              # (tS, D) float32
    if batch_per_block == 1:
        out_ref[...] = (emb_ref[...].astype(jnp.float32) * scale + pe).astype(out_ref.dtype)
    else:
        # Per-batch D-wide slice add: no jnp.tile materialization of a (tS, B*D)
        # pe copy; D % 128 == 0 on this path so every slice store is aligned and
        # unmasked.
        for b in range(batch_per_block):
            sl = slice(b * d, (b + 1) * d)
            out_ref[:, sl] = (
                emb_ref[:, sl].astype(jnp.float32) * scale + pe
            ).astype(out_ref.dtype)
    # TODO(synk): nn.Dropout in training mode not implemented (eval/inference
    # semantics: dropout = identity). Could use pltpu.prng_seed/prng_random_bits.


def _choose_tiles(S, B, D, itemsize, sub, target_bytes=_TARGET_TILE_BYTES):
    """Pick (tS, bB): sequence-tile rows and batches-per-block (bB divides B)."""
    d_bytes = D * itemsize
    # Lane-axis (batch-group) tiling: block width = bB*D. Keep the unroll short
    # and make sure at least `sub` rows fit under the byte target.
    bB = B
    while bB > 1 and (bB > _MAX_BATCH_PER_BLOCK or bB * d_bytes * sub > target_bytes):
        bB -= 1
        while bB > 1 and B % bB != 0:
            bB -= 1
    row_bytes = bB * d_bytes
    tS = max(1, target_bytes // row_bytes)
    if tS >= S:
        tS = S
    else:
        tS = max(sub, (tS // sub) * sub)
    # Guarantee >= 2 grid steps when the shape allows (pipelining + v7x megacore).
    if (pl.cdiv(S, tS) * (B // bB)) < 2 and S >= 2 * sub:
        tS = sub * pl.cdiv(pl.cdiv(S, 2), sub)
    return int(tS), int(bB)


def positional_encoding_forward(emb, pe, dim, step=None, *,
                                tile_s=None, tile_b=None, force_pallas=False):
    """Forward of PositionalEncoding (dropout = identity / eval semantics)."""
    scale = math.sqrt(dim)

    if step is not None:
        # Decode path (emb is (B, D)): tiny elementwise op -> plain JAX so XLA
        # fuses it into the surrounding decode graph.
        if isinstance(step, int) and step >= pe.shape[0]:
            raise ValueError(f"step {step} >= max_len {pe.shape[0]}")
        # TODO(synk): a traced step >= max_len is clamped by JAX gather semantics.
        pos = pe[step]
        return (emb.astype(jnp.float32) * scale + pos[None, :]).astype(emb.dtype)

    S, B, D = emb.shape
    if S > pe.shape[0]:
        raise ValueError(f"sequence length {S} exceeds positional table max_len {pe.shape[0]}")

    itemsize = jnp.dtype(emb.dtype).itemsize
    total_bytes = S * B * D * itemsize
    # Pallas path needs D % 128 == 0 (aligned per-batch lane slices); tiny shapes
    # are faster as a fused XLA op.
    use_pallas = (D % 128 == 0) and (force_pallas or total_bytes >= _MIN_PALLAS_BYTES)
    if not use_pallas:
        return (emb.astype(jnp.float32) * scale + pe[:S][:, None, :]).astype(emb.dtype)

    sub = _sublane_multiple(itemsize)
    tS, bB = _choose_tiles(S, B, D, itemsize, sub)
    if tile_s is not None:
        tS = int(min(tile_s, S))
        if tS < S:
            tS = max(sub, (tS // sub) * sub)
    if tile_b is not None and B % int(tile_b) == 0:
        bB = int(tile_b)

    emb2d = emb.reshape(S, B * D)                 # lane-dense: D innermost, B outer
    grid = (pl.cdiv(S, tS), B // bB)              # lane axis inner -> pe tile stays resident

    kernel = functools.partial(_pos_enc_kernel, scale=scale, d=D, batch_per_block=bB)
    out2d = pl.pallas_call(
        kernel,
        out_shape=jax.ShapeDtypeStruct((S, B * D), emb.dtype),
        grid_spec=pl.GridSpec(
            grid=grid,
            in_specs=[
                pl.BlockSpec((tS, bB * D), lambda i, j: (i, j)),   # emb2d
                pl.BlockSpec((tS, D), lambda i, j: (i, 0)),        # pe (full table, f32)
            ],
            out_specs=pl.BlockSpec((tS, bB * D), lambda i, j: (i, j)),
        ),
        compiler_params=pltpu.CompilerParams(
            dimension_semantics=("parallel", "parallel"),
            vmem_limit_bytes=_VMEM_LIMIT_BYTES,
        ),
    )(emb2d, pe)
    return out2d.reshape(S, B, D)


if __name__ == "__main__":
    key = jax.random.PRNGKey(0)
    MAX_LEN = 200

    # 1) Small shape consistent with the module (seq=8, batch=2, hidden=32):
    #    B*D = 64 < 128 lanes -> plain-JAX fallback path.
    S, B, D = 8, 2, 32
    emb = jax.random.normal(key, (S, B, D), dtype=jnp.float32)
    pe = make_pe(MAX_LEN, D)
    out = jax.block_until_ready(positional_encoding_forward(emb, pe, dim=D))
    ref = emb * math.sqrt(D) + pe[:S][:, None, :]
    assert out.shape == (S, B, D)
    assert jnp.allclose(out, ref, atol=1e-5, rtol=1e-5)

    # 2) Pallas path, multi-tile pipelined grid along the sequence axis.
    S2, B2, D2 = 64, 2, 128
    emb2 = jax.random.normal(jax.random.PRNGKey(1), (S2, B2, D2), dtype=jnp.float32)
    pe2 = make_pe(MAX_LEN, D2)
    out2 = positional_encoding_forward(emb2, pe2, dim=D2, tile_s=16, force_pallas=True)
    out2 = jax.block_until_ready(out2)
    ref2 = emb2 * math.sqrt(D2) + pe2[:S2][:, None, :]
    assert jnp.allclose(out2, ref2, atol=1e-5, rtol=1e-5)

    # 3) Pallas path with lane-axis (batch-group) tiling: grid = (2, 2).
    S3, B3, D3 = 32, 4, 128
    emb3 = jax.random.normal(jax.random.PRNGKey(2), (S3, B3, D3), dtype=jnp.float32)
    pe3 = make_pe(MAX_LEN, D3)
    out3 = positional_encoding_forward(emb3, pe3, dim=D3, tile_s=16, tile_b=2,
                                       force_pallas=True)
    out3 = jax.block_until_ready(out3)
    ref3 = emb3 * math.sqrt(D3) + pe3[:S3][:, None, :]
    assert jnp.allclose(out3, ref3, atol=1e-5, rtol=1e-5)

    # 4) bf16 activations: add done in f32 in-kernel, single cast on store.
    emb4 = jax.random.normal(jax.random.PRNGKey(3), (S2, B2, D2), dtype=jnp.bfloat16)
    out4 = positional_encoding_forward(emb4, pe2, dim=D2, force_pallas=True)
    out4 = jax.block_until_ready(out4)
    ref4 = (emb4.astype(jnp.float32) * math.sqrt(D2)
            + pe2[:S2][:, None, :]).astype(jnp.bfloat16)
    assert jnp.allclose(out4.astype(jnp.float32), ref4.astype(jnp.float32),
                        atol=1e-2, rtol=1e-2)

    # 5) Step-mode (decode) check — plain-JAX fused path.
    out_step = positional_encoding_forward(emb[0], pe, dim=D, step=3)
    out_step = jax.block_until_ready(out_step)
    ref_step = emb[0] * math.sqrt(D) + pe[3][None, :]
    assert jnp.allclose(out_step, ref_step, atol=1e-5, rtol=1e-5)

    print("KERNEL_OK")
</pallas_src>

<mosaic_0001>
module attributes {stable_mosaic.version = 11 : i64} {
  func.func @_pos_enc_kernel(%arg0: i32, %arg1: i32, %arg2: memref<16x256xf32, #tpu.memory_space<vmem>>, %arg3: memref<16x128xf32, #tpu.memory_space<vmem>>, %arg4: memref<16x256xf32, #tpu.memory_space<vmem>>) attributes {dimension_semantics = [#tpu.dimension_semantics<parallel>, #tpu.dimension_semantics<parallel>], iteration_bounds = array<i64: 4, 1>, scalar_prefetch = 0 : i64, scratch_operands = 0 : i64, tpu.core_type = #tpu.core_type<tc>, window_params = [{transform_indices = @transform_0, window_bounds = array<i64: 16, 256>}, {transform_indices = @transform_1, window_bounds = array<i64: 16, 128>}, {transform_indices = @transform_2, window_bounds = array<i64: 16, 256>}]} {
    %c0 = arith.constant 0 : index
    %c0_0 = arith.constant 0 : index
    %0 = vector.load %arg3[%c0, %c0_0] : memref<16x128xf32, #tpu.memory_space<vmem>>, vector<16x128xf32>
    %c0_1 = arith.constant 0 : index
    %c0_2 = arith.constant 0 : index
    %1 = vector.load %arg2[%c0_1, %c0_2] : memref<16x256xf32, #tpu.memory_space<vmem>>, vector<16x128xf32>
    %cst = arith.constant 11.3137083 : f32
    %2 = vector.broadcast %cst : f32 to vector<16x128xf32>
    %3 = arith.mulf %1, %2 : vector<16x128xf32>
    %4 = arith.addf %3, %0 : vector<16x128xf32>
    %c0_3 = arith.constant 0 : index
    %c0_4 = arith.constant 0 : index
    %5 = vector.load %arg4[%c0_3, %c0_4] : memref<16x256xf32, #tpu.memory_space<vmem>>, vector<16x128xf32>
    tpu.vector_store %arg4[%c0_3, %c0_4], %4 {strides = array<i32>} : memref<16x256xf32, #tpu.memory_space<vmem>>, vector<16x128xf32>,
    %c0_5 = arith.constant 0 : index
    %c128 = arith.constant 128 : index
    %6 = vector.load %arg2[%c0_5, %c128] : memref<16x256xf32, #tpu.memory_space<vmem>>, vector<16x128xf32>
    %cst_6 = arith.constant 11.3137083 : f32
    %7 = vector.broadcast %cst_6 : f32 to vector<16x128xf32>
    %8 = arith.mulf %6, %7 : vector<16x128xf32>
    %9 = arith.addf %8, %0 : vector<16x128xf32>
    %c0_7 = arith.constant 0 : index
    %c128_8 = arith.constant 128 : index
    %10 = vector.load %arg4[%c0_7, %c128_8] : memref<16x256xf32, #tpu.memory_space<vmem>>, vector<16x128xf32>
    tpu.vector_store %arg4[%c0_7, %c128_8], %9 {strides = array<i32>} : memref<16x256xf32, #tpu.memory_space<vmem>>, vector<16x128xf32>,
    return
  }
  func.func @transform_0(%arg0: i32, %arg1: i32) -> (i32, i32) {
    %c0_i32 = arith.constant 0 : i32
    return %arg0, %arg1 : i32, i32
  }
  func.func @transform_1(%arg0: i32, %arg1: i32) -> (i32, i32) {
    %c0_i32 = arith.constant 0 : i32
    %c0_i32_0 = arith.constant 0 : i32
    return %arg0, %c0_i32 : i32, i32
  }
  func.func @transform_2(%arg0: i32, %arg1: i32) -> (i32, i32) {
    %c0_i32 = arith.constant 0 : i32
    return %arg0, %arg1 : i32, i32
  }
}

</mosaic_0001>

<bundles_post_ra>
// kernel: tpu_custom_call.1
= control target key start
LH: loop header
LB: loop body
LE: loop exit
PB: predicated region body
PF: predicated region fallthrough
CT: control target
= control target key end

     0   :  { %7 = vsyncpa [#allocation3], 0  ;;  %s838_s0 = inlined_call_operand.hbm [shape: f32[64,256], index: 0, kind: input, shape index: {}]   ;;  %s839_s1 = inlined_call_operand.hbm [shape: f32[200,128], index: 1, kind: input, shape index: {}]   ;;  %s840_s2 = inlined_call_operand.hbm [shape: f32[64,256], index: 2, kind: output, shape index: {}]  }
   0x1   :  { %9 = vsyncpa [#allocation3 + $0x1], 0 }
   0x2   :  { %10 = vsyncpa [#allocation6], 0 }
   0x3   :  { %12 = vsyncpa [#allocation6 + $0x1], 0 }
   0x4   :  { %13 = vsyncpa [#allocation4], 0 }
   0x5   :  { %15 = vsyncpa [#allocation4 + $0x1], 0  ;;  %s645_s9 = smov 0   ;;  %s647_s10 = smov 0  }
   0x6   :  { %s649_s11 = smov 0   ;;  %s651_s12 = smov 0  }
   0x7   :  { %s653_s13 = smov 0   ;;  %s655_s14 = smov 0  }
   0x8 LB: > { %s381_s15 = sadd.s32 4294967295, %s619_s14   ;;  %s382_s16 = sadd.s32 4294967294, %s619_s14   ;;  %s619_s14 = sphi %s655_s14, %s21_s14   ;;  %s615_s13 = sphi %s653_s13, %s852_s13   ;;  %s611_s12 = sphi %s651_s12, %s851_s12   ;;  %s607_s11 = sphi %s649_s11, %s850_s11   ;;  %s603_s10 = sphi %s647_s10, %s849_s10   ;;  %s599_s9 = sphi %s645_s9, %s848_s9  }
   0x9   : > { %s33_s17 = sadd.s32 1, %s615_s13  ;;  %s42_s18 = sadd.s32 1, %s607_s11 }
   0xa   : > { %p35_p0 = scmp.ge.s32.totalorder %s33_s17, 4  ;;  %p49_p1 = scmp.ne.s32.totalorder %s607_s11, %s603_s10 }
   0xb   : > { %p50_p2 = scmp.eq.s32.totalorder %s619_s14, 0  ;;  %p55_p3 = scmp.ne.s32.totalorder %s603_s10, %s599_s9 }
   0xc   : > { %s854_s17 = smov (%p35_p0, %s33_s17), 0  ;;  %p56_p5 = scmp.eq.s32.totalorder %s381_s15, 0 }
   0xd   : > { %p686_p4 = por %p50_p2, %p49_p1  ;;  %s37_s20 = ssub.s32 %s615_s13, %s854_s17 }
   0xe   : > { %p107_p6 = scmp.eq.s32.totalorder %s381_s15, 3  ;;  %p40_p7 = scmp.eq.s32.totalorder %s37_s20, 0 }
   0xf   : > { %p692_p8 = por %p56_p5, %p55_p3  ;;  %p113_p10 = scmp.eq.s32.totalorder %s382_s16, 3 }
  0x10   : > { %p696_p9 = por %p107_p6, %p49_p1  ;;  %p384_p12 = scmp.ge.s32.totalorder %s619_s14, 4 }
  0x11   : > { %s701_s23 = scalar_select %p40_p7, %s607_s11, %s42_s18  }
  0x12   : > { %s844_s22 = scalar_select %p696_p9, 1, 0 }
  0x13   : > { %p703_p11 = por %p113_p10, %p55_p3  ;;  %129 = sbr.rel (%p384_p12) target bundleno = 73 (0x49), region = 16 }
  0x14   : > { %s709_s25 = sand.u32 (!%p384_p12), 1, %s607_s11   ;;  %s407_s26 = sshll.u32 (!%p384_p12), %s615_s13, 9 }
  0x15   : > { %s845_s24 = scalar_select %p703_p11, 1, 0 }
  0x16   : > { %s385_s27 = sshll.u32 (!%p384_p12), %s709_s25, 5  ;;  %s716_s30 = scalar_lea.hbm (!%p384_p12), %s838_s0, %s407_s26 }
  0x17   : > { %s137_s3 = scalar_lea.vmem (!%p384_p12), [#allocation2], %s385_s27  ;;  %s134_s5 = scalar_lea.sflag (!%p384_p12), [#allocation3], %s709_s25 }
  0x18   : > { %s147_s4 = sshll.u32 (!%p384_p12), %s137_s3, 4  ;;  %s475_s6 = scalar_lea.hbm (!%p384_p12), %s716_s30, 512  ;;  %s718_s4 = int_to_ptr.vmem [resolvable:$true] %s147_s4 }
  0x19   : > { %p476_p13 = scmp.ne.s32.totalorder (!%p384_p12), %s716_s30, %s475_s6  ;;  %s479_s15 = scalar_lea.hbm (!%p384_p12), %s838_s0, 2048 }
  0x1a   : > { %p480_p2 = scmp.lt.u32.totalorder %s716_s30, %s838_s0  ;;  %p481_p3 = scmp.lt.u32.totalorder %s479_s15, %s475_s6 }
  0x1b   : > { %p477_p0 = pnand %p476_p13, %p686_p4  ;;  %p483_p6 = scmp.lt.u32.totalorder %s475_s6, %s716_s30 }
  0x1c   : > { %p482_p5 = por %p481_p3, %p480_p2 }
  0x1d   : > { %p478_p1 = pneg %p477_p0 }
  0x1e   : > { %p484_p7 = por %p483_p6, %p482_p5 }
  0x20   : > { %p485_p10 = pnand %p484_p7, %p478_p1 }
  0x22   : > { %488 = shalt.err (!%p485_p10)
}
  0x23   : > { %s489_s20 = scalar_lea.vmem %s718_s4, 512  ;;  %s621_s26 = smov [#allocation2]  }
  0x24   : > { %p490_p12 = scmp.ne.s32.totalorder %s718_s4, %s489_s20  ;;  %s493_s27 = sshll.u32 %s621_s26, 4  ;;  %s494_s27 = int_to_ptr.vmem [resolvable:$false] %s493_s27 }
  0x25   : > { %s495_s28 = scalar_lea.vmem %s494_s27, 1024  ;;  %p496_p11 = scmp.lt.s32.totalorder %s718_s4, %s494_s27 }
  0x26   : > { %p491_p13 = pnand %p490_p12, %p686_p4  ;;  %p497_p9 = scmp.lt.s32.totalorder %s495_s28, %s489_s20 }
  0x28   : > { %p492_p0 = pneg %p491_p13  ;;  %p498_p2 = por %p497_p9, %p496_p11 }
  0x2a   : > { %p499_p3 = pnand %p498_p2, %p492_p0 }
  0x2c   : > { %502 = shalt.err (!%p499_p3)
}
  0x2d   : > { %s622_s29 = smov 256   ;;  %s623_s3 = smov 16  }
  0x2e   : > { %411 = dma.hbm_to_vmem [thread:$0]  (%p686_p4), %s716_s30, 512, %s718_s4, %s134_s5, %s622_s29, %s622_s29, %s623_s3  }
  0x2f   : > { %156 = sbr.rel (!%p686_p4) target bundleno = 73 (0x49), region = 24  ;;  %s389_s6 = sshll.u32 (%p686_p4), %s709_s25, 4 }
  0x30   : > { %s158_s7 = scalar_lea.sflag (%p686_p4), [#allocation6], %s709_s25  ;;  %s161_s8 = scalar_lea.vmem (%p686_p4), [#allocation5], %s389_s6 }
  0x31   : > { %s408_s15 = sshll.u32 (%p686_p4), %s615_s13, 8  ;;  %s174_s30 = sshll.u32 (%p686_p4), %s161_s8, 4  ;;  %s175_s30 = int_to_ptr.vmem [resolvable:$true] %s174_s30 }
  0x32   : > { %s752_s20 = scalar_lea.hbm (%p686_p4), %s839_s1, %s408_s15  ;;  %s507_s26 = scalar_lea.hbm (%p686_p4), %s839_s1, 3200 }
  0x33   : > { %s503_s19 = scalar_lea.hbm (%p686_p4), %s752_s20, 256  ;;  %p508_p9 = scmp.lt.u32.totalorder (%p686_p4), %s752_s20, %s839_s1 }
  0x34   : > { %p504_p4 = scmp.ne.s32.totalorder (%p686_p4), %s752_s20, %s503_s19  ;;  %p509_p11 = scmp.lt.u32.totalorder (%p686_p4), %s507_s26, %s503_s19 }
  0x36   : > { %p510_p1 = por %p509_p11, %p508_p9  ;;  %p511_p5 = scmp.lt.u32.totalorder %s503_s19, %s752_s20 }
  0x38   : > { %p512_p6 = por %p511_p5, %p510_p1 }
  0x3a   : > { %p513_p7 = pnand %p512_p6, %p504_p4 }
  0x3c   : > { %516 = shalt.err (!%p513_p7)
}
  0x3d   : > { %s517_s29 = scalar_lea.vmem %s175_s30, 256  ;;  %s624_s3 = smov [#allocation5]  }
  0x3e   : > { %p518_p10 = scmp.ne.s32.totalorder %s175_s30, %s517_s29  ;;  %s521_s6 = sshll.u32 %s624_s3, 4  ;;  %s522_s6 = int_to_ptr.vmem [resolvable:$false] %s521_s6 }
  0x3f   : > { %s523_s8 = scalar_lea.vmem %s522_s6, 512  ;;  %p524_p12 = scmp.lt.s32.totalorder %s175_s30, %s522_s6 }
  0x40   : > { %p525_p13 = scmp.lt.s32.totalorder %s523_s8, %s517_s29 }
  0x42   : > { %p526_p0 = por %p525_p13, %p524_p12 }
  0x44   : > { %p527_p2 = pnand %p526_p0, %p518_p10 }
  0x46   : > { %530 = shalt.err (!%p527_p2)
}
  0x47   : > { %s625_s15 = smov 128   ;;  %s626_s16 = smov 8  }
  0x48   : > { %180 = dma.hbm_to_vmem [thread:$0]  %s752_s20, 256, %s175_s30, %s158_s7, %s625_s15, %s625_s15, %s626_s16  }
  0x49 PF: > { %p396_p3 = scmp.ge.s32.totalorder %s619_s14, 1  ;;  %p182_p4 = scmp.lt.s32.totalorder %s619_s14, 5 }
  0x4b   : > { %p183_p9 = pnand %p396_p3, %p182_p4 }
  0x4c   : > { %s770_s18 = sand.u32 (!%p183_p9), 1, %s603_s10  }
  0x4d   : > { %186 = sbr.rel (%p183_p9) target bundleno = 115 (0x73), region = 28  ;;  %s397_s19 = sshll.u32 (!%p183_p9), %s770_s18, 5 }
  0x4e   : > { %s189_s4 = scalar_lea.sflag (!%p183_p9), [#allocation3], %s770_s18  ;;  %s192_s5 = scalar_lea.vmem (!%p183_p9), [#allocation2], %s397_s19 }
  0x54   : > { %584 = dma.done.wait (%p692_p8), %s189_s4, 512  }
  0x55   : > { %586 = vsyncadd (%p692_p8), %s189_s4, 4294966784  ;;  %s398_s25 = sshll.u32 %s770_s18, 4  ;;  %s198_s7 = scalar_lea.sflag [#allocation6], %s770_s18 }
  0x56   : > { %s201_s20 = scalar_lea.vmem [#allocation5], %s398_s25 }
  0x57   : > { %588 = dma.done.wait (%p692_p8), %s198_s7, 256  }
  0x58   : > { %590 = vsyncadd (%p692_p8), %s198_s7, 4294967040  ;;  %v236_v0 = vld [vmem:[%s201_s20] sm:$0xff]  ;;  %s226_s30 = scalar_lea.vmem [#allocation7], %s397_s19  ;;  %v237_v2 = vld [vmem:[%s201_s20 + $0x8] sm:$0xff]  ;;  %s410_s27 = sshll.u32 %s611_s12, 9 }
  0x59   : > { %v238_v1 = vld [vmem:[%s192_s5] sm:$0xff]  ;;  %s271_s26 = sshll.u32 %s226_s30, 4  ;;  %v239_v4 = vld [vmem:[%s192_s5 + $0x10] sm:$0xff]  ;;  %v246_v5 = vld [vmem:[%s192_s5 + $0x8] sm:$0xff]  ;;  %s790_s29 = scalar_lea.hbm %s840_s2, %s410_s27  ;;  %s785_s26 = int_to_ptr.vmem [resolvable:$true] %s271_s26 }
  0x5a   : > { %v240_v3 = vmul.f32 11.313708, %v238_v1  ;;  %v247_v6 = vld [vmem:[%s192_s5 + $0x18] sm:$0xff]  ;;  %v241_v7 = vmul.f32 11.313708, %v239_v4  ;;  %s255_s12 = scalar_lea.sflag [#allocation4], %s770_s18 }
  0x5b   : > { %v248_v8 = vmul.f32 11.313708, %v246_v5  ;;  %v249_v9 = vmul.f32 11.313708, %v247_v6  ;;  %s531_s3 = scalar_lea.vmem %s785_s26, 512  ;;  %p846_p11 = scmp.ne.s32.totalorder %s844_s22, 0 }
  0x5c   : > { %v242_v10 = vadd.f32 %v240_v3, %v236_v0  ;;  %v243_v11 = vadd.f32 %v241_v7, %v237_v2  ;;  %p532_p8 = scmp.ne.s32.totalorder %s785_s26, %s531_s3  ;;  %s627_s6 = smov [#allocation7]  }
  0x5d   : > { %v250_v12 = vadd.f32 %v248_v8, %v236_v0  ;;  %v251_v13 = vadd.f32 %v249_v9, %v237_v2  ;;  %s535_s8 = sshll.u32 %s627_s6, 4  ;;  %s536_s8 = int_to_ptr.vmem [resolvable:$false] %s535_s8 }
  0x5e   : > { %244 = vst [vmem:[%s226_s30] sm:$0xff] %v242_v10  ;;  %245 = vst [vmem:[%s226_s30 + $0x10] sm:$0xff] %v243_v11  ;;  %p533_p1 = pnand %p532_p8, %p846_p11  ;;  %s537_s15 = scalar_lea.vmem %s536_s8, 1024 }
  0x5f   : > { %252 = vst [vmem:[%s226_s30 + $0x8] sm:$0xff] %v250_v12  ;;  %253 = vst [vmem:[%s226_s30 + $0x18] sm:$0xff] %v251_v13  ;;  %p538_p6 = scmp.lt.s32.totalorder %s785_s26, %s536_s8  ;;  %p539_p7 = scmp.lt.s32.totalorder %s537_s15, %s531_s3 }
  0x60   : > { %p534_p5 = pneg %p533_p1 }
  0x61   : > { %p540_p10 = por %p539_p7, %p538_p6 }
  0x63   : > { %p541_p12 = pnand %p540_p10, %p534_p5 }
  0x65   : > { %544 = shalt.err (!%p541_p12)
}
  0x66   : > { %s545_s16 = scalar_lea.hbm %s790_s29, 512  ;;  %s549_s5 = scalar_lea.hbm %s840_s2, 2048 }
  0x67   : > { %p546_p13 = scmp.ne.s32.totalorder %s790_s29, %s545_s16  ;;  %p550_p3 = scmp.lt.u32.totalorder %s790_s29, %s840_s2 }
  0x68   : > { %p551_p4 = scmp.lt.u32.totalorder %s549_s5, %s545_s16  ;;  %p553_p8 = scmp.lt.u32.totalorder %s545_s16, %s790_s29 }
  0x69   : > { %p547_p0 = pnand %p546_p13, %p846_p11 }
  0x6a   : > { %p552_p9 = por %p551_p4, %p550_p3 }
  0x6b   : > { %p548_p2 = pneg %p547_p0 }
  0x6c   : > { %p554_p1 = por %p553_p8, %p552_p9 }
  0x6e   : > { %p555_p5 = pnand %p554_p1, %p548_p2 }
  0x70   : > { %558 = shalt.err (!%p555_p5)
}
  0x71   : > { %s628_s20 = smov 256   ;;  %s629_s30 = smov 16  }
  0x72   : > { %414 = dma.vmem_to_hbm [thread:$0]  (%p846_p11), %s785_s26, 512, %s790_s29, %s255_s12, %s628_s20, %s628_s20, %s629_s30  }
  0x73 PF: > { %p420_p6 = scmp.ge.s32.totalorder %s619_s14, 2  ;;  %s286_s27 = sand.u32 1, %s599_s9  }
  0x74   : > { %p847_p7 = scmp.ne.s32.totalorder %s845_s24, 0  ;;  %s287_s21 = scalar_lea.sflag [#allocation4], %s286_s27 }
  0x76   : > { %p417_p10 = pnand %p420_p6, %p847_p7 }
  0x78   : > { %592 = dma.done.wait (!%p417_p10), %s287_s21, 512  }
  0x79   : > { %594 = vsyncadd (!%p417_p10), %s287_s21, 4294966784  ;;  %s21_s14 = sadd.s32 1, %s619_s14   ;;  %s848_s9 = smov %s603_s10 }
  0x7a   : > { %p18_p12 = scmp.ge.s32.totalorder %s21_s14, 6   ;;  %s849_s10 = smov %s607_s11 }
  0x7b   : > { %s850_s11 = smov %s701_s23  ;;  %s851_s12 = smov %s615_s13 }
  0x7c   : > { %s852_s13 = smov %s854_s17  ;;  %20 = sbr.rel (!%p18_p12) target bundleno = 8 (0x8), region = 86 }
  0x83   :  { %292 = vsyncpa [#allocation3], 1 }
  0x84   :  { %294 = vsyncpa [#allocation3 + $0x1], 1 }
  0x85   :  { %295 = vsyncpa [#allocation6], 1 }
  0x86   :  { %297 = vsyncpa [#allocation6 + $0x1], 1 }
  0x87   :  { %298 = vsyncpa [#allocation4], 1 }
  0x88   :  { %300 = vsyncpa [#allocation4 + $0x1], 1 }

</bundles_post_ra>
